<compile_context>
chip_gen: v7x
topology: tpu7x:2x2x1
jax: 0.10.0
libtpu: 0.0.40
codegen_flags: <defaults>
</compile_context>

<pallas_src>
import functools

import jax
import jax.numpy as jnp
from jax.experimental import pallas as pl
from jax.experimental.pallas import tpu as pltpu


def _ls_ce_kernel(x_ref, tgt_ref, out_ref, acc_ref, m_ref, l_ref, s_ref, *,
                  smoothing, num_classes, total_n, block_n, block_c,
                  tiles_per_part, c_tiles, need_row_mask, need_class_mask):
    p = pl.program_id(0)          # partition (parallel; megacore on 2-TC chips)
    i = pl.program_id(1)          # batch tile within partition (reduction)
    k = pl.program_id(2)          # class chunk (reduction, online LSE)

    confidence = 1.0 - smoothing
    is_last_k = k == c_tiles - 1

    @pl.when((i == 0) & (k == 0))
    def _():
        acc_ref[...] = jnp.zeros_like(acc_ref)

    @pl.when(k == 0)
    def _():
        m_ref[...] = jnp.full_like(m_ref, -jnp.inf)
        l_ref[...] = jnp.zeros_like(l_ref)
        s_ref[...] = jnp.zeros_like(s_ref)

    x = x_ref[...].astype(jnp.float32)                      # (bn, bc) f32 in-register
    tgt = tgt_ref[...]                                      # (bn, 1) int32
    cls = k * block_c + jax.lax.broadcasted_iota(jnp.int32, (1, block_c), 1)
    # Per-class weight of (-logprob): smoothing/C everywhere + confidence at the target.
    w = (smoothing / num_classes) + confidence * (cls == tgt).astype(jnp.float32)

    def online_update(valid):
        # valid is None (full chunk) or a (1, bc) mask for a ragged last class chunk.
        xm = x if valid is None else jnp.where(valid, x, -jnp.inf)
        m_prev = m_ref[...]
        m_new = jnp.maximum(m_prev, jnp.max(xm, axis=-1, keepdims=True))
        l_ref[...] = (l_ref[...] * jnp.exp(m_prev - m_new)
                      + jnp.sum(jnp.exp(xm - m_new), axis=-1, keepdims=True))
        wx = w * x                                          # single fused weighted reduce
        if valid is not None:
            wx = jnp.where(valid, wx, 0.0)
        s_ref[...] += jnp.sum(wx, axis=-1, keepdims=True)
        m_ref[...] = m_new

    if need_class_mask:
        @pl.when(k < c_tiles - 1)
        def _():
            online_update(None)

        @pl.when(is_last_k)
        def _():
            online_update(cls < num_classes)
    else:
        online_update(None)

    def row_loss():
        # loss_row = lse - sum_j w_j x_j,  lse = m + log(sum exp(x - m)),  sum_j w_j = 1
        return m_ref[...] + jnp.log(l_ref[...]) - s_ref[...]

    tile_idx = p * tiles_per_part + i
    if need_row_mask:
        full_tiles = total_n // block_n                     # tiles entirely in-bounds

        @pl.when(is_last_k & (tile_idx < full_tiles))
        def _():
            acc_ref[...] += row_loss()

        @pl.when(is_last_k & (tile_idx >= full_tiles))      # ragged / duplicated tiles only
        def _():
            rows = tile_idx * block_n + jax.lax.broadcasted_iota(
                jnp.int32, (block_n, 1), 0)
            acc_ref[...] += jnp.where(rows < total_n, row_loss(), 0.0)
    else:
        @pl.when(is_last_k)
        def _():
            acc_ref[...] += row_loss()

    @pl.when(is_last_k & (i == tiles_per_part - 1))
    def _():
        part = jnp.sum(acc_ref[...])                        # one XLU reduce per partition
        rr = jax.lax.broadcasted_iota(jnp.int32, (8, 128), 0)
        cc = jax.lax.broadcasted_iota(jnp.int32, (8, 128), 1)
        out_ref[...] = jnp.where((rr == 0) & (cc == 0), part, 0.0)


def _round_up(v, m):
    return ((v + m - 1) // m) * m


def _cdiv(a, b):
    return -(-a // b)


def _is_two_core_chip():
    # v7x exposes 2 TensorCores per chip; v5e/v6e (and older -e parts) expose 1.
    try:
        kind = jax.devices()[0].device_kind.lower()
    except Exception:
        return False
    return "7" in kind


def _pick_tiles(n, c, itemsize, num_parts, small_vmem):
    """Pick (block_n, block_c) sized against VMEM *including* f32 temporaries."""
    row_align = max(8, 32 // itemsize)            # 8 for f32, 16 for bf16, 32 for int8/fp8
    budget = (36 if small_vmem else 88) << 20     # working-set budget (64 vs 128 MiB VMEM)
    per_elem = 2 * itemsize + 5 * 4               # dbl-buffered input + ~5 f32 temporaries

    rows_wanted = min(1024, _round_up(max(1, _cdiv(n, num_parts)), row_align))

    rows_whole_c = (budget // (per_elem * c)) // row_align * row_align
    if rows_whole_c >= min(128, rows_wanted):
        block_c = c                               # whole rows, no class tiling
    else:
        # Class-dim tiling (online LSE): aim for ~256-row tiles, 128-lane multiples.
        tgt_rows = max(row_align, min(256, rows_wanted))
        block_c = min(c, max(128, (budget // (per_elem * tgt_rows)) // 128 * 128))

    block_n = (budget // (per_elem * block_c)) // row_align * row_align
    block_n = max(row_align, min(block_n, rows_wanted))
    return block_n, block_c


def label_smoothing_cross_entropy(x, target, smoothing=0.1):
    """x: (N, C) float logits (f32 or bf16); target: (N,) int labels. Returns scalar f32."""
    n, c = x.shape
    itemsize = jnp.dtype(x.dtype).itemsize
    two_core = _is_two_core_chip()
    num_parts = 2 if two_core else 1

    block_n, block_c = _pick_tiles(n, c, itemsize, num_parts, two_core)
    total_tiles = _cdiv(n, block_n)
    tiles_per_part = _cdiv(total_tiles, num_parts)
    c_tiles = _cdiv(c, block_c)

    need_row_mask = (n % block_n != 0) or (num_parts * tiles_per_part != total_tiles)
    need_class_mask = (c % block_c != 0)

    tgt2d = target.astype(jnp.int32).reshape(n, 1)

    def x_index(pp, ii, kk):
        t = jnp.minimum(pp * tiles_per_part + ii, total_tiles - 1)  # clamp duplicates
        return (t, kk)

    def tgt_index(pp, ii, kk):
        t = jnp.minimum(pp * tiles_per_part + ii, total_tiles - 1)
        return (t, 0)

    kernel = functools.partial(
        _ls_ce_kernel, smoothing=float(smoothing), num_classes=c, total_n=n,
        block_n=block_n, block_c=block_c, tiles_per_part=tiles_per_part,
        c_tiles=c_tiles, need_row_mask=need_row_mask, need_class_mask=need_class_mask)

    # VMEM: double-buffered input tiles + ~5 (bn,bc) f32 elementwise temporaries
    # (f32 cast, exp, weights, weighted product, slack) + per-row carry scratch.
    x_tile = block_n * block_c * itemsize
    tgt_tile = block_n * 512                     # (bn,1) int32 occupies full 128-lane tiles
    temps = 5 * block_n * block_c * 4
    scratch = 4 * block_n * 512
    need = 2 * (x_tile + tgt_tile) + temps + scratch + num_parts * 4096 + (2 << 20)
    ceiling = (56 << 20) if two_core else (112 << 20)
    vmem_limit = int(min(ceiling, max(need, 16 << 20)))

    out = pl.pallas_call(
        kernel,
        out_shape=jax.ShapeDtypeStruct((num_parts * 8, 128), jnp.float32),
        grid_spec=pltpu.PrefetchScalarGridSpec(
            num_scalar_prefetch=0,
            grid=(num_parts, tiles_per_part, c_tiles),
            in_specs=[
                # (Optionally sweep pipeline_mode=pl.Buffered(3) if DMA is exposed.)
                pl.BlockSpec((block_n, block_c), x_index),
                pl.BlockSpec((block_n, 1), tgt_index),
            ],
            out_specs=pl.BlockSpec((8, 128), lambda pp, ii, kk: (pp, 0)),
            scratch_shapes=[
                pltpu.VMEM((block_n, 1), jnp.float32),   # acc: per-row loss partials
                pltpu.VMEM((block_n, 1), jnp.float32),   # m:   running max
                pltpu.VMEM((block_n, 1), jnp.float32),   # l:   running sum(exp(x - m))
                pltpu.VMEM((block_n, 1), jnp.float32),   # s:   running sum(w * x)
            ],
        ),
        compiler_params=pltpu.CompilerParams(
            dimension_semantics=("parallel", "arbitrary", "arbitrary"),
            vmem_limit_bytes=vmem_limit),
    )(x, tgt2d)

    # Combine per-partition partial sums (one nonzero lane per partition block)
    # and take the batch mean.
    return jnp.sum(out) / jnp.float32(n)


def _reference(x, target, smoothing):
    confidence = 1.0 - smoothing
    logprobs = jax.nn.log_softmax(x.astype(jnp.float32), axis=-1)
    nll = -jnp.take_along_axis(logprobs, target[:, None], axis=-1)[:, 0]
    smooth = -jnp.mean(logprobs, axis=-1)
    return jnp.mean(confidence * nll + smoothing * smooth)


if __name__ == "__main__":
    # LabelSmoothingCrossEntropy(coeff_smooth=0.1); no learnable parameters.
    smoothing = 0.1
    key = jax.random.PRNGKey(0)
    kx, kt, kx2, kt2 = jax.random.split(key, 4)

    # Main check: (N, C) = (16, 32) f32 logits.
    x = jax.random.normal(kx, (16, 32), dtype=jnp.float32)
    target = jax.random.randint(kt, (16,), 0, 32, dtype=jnp.int32)
    loss = jax.block_until_ready(label_smoothing_cross_entropy(x, target, smoothing))
    ref = _reference(x, target, smoothing)
    assert jnp.allclose(loss, ref, atol=1e-5, rtol=1e-5), (loss, ref)

    # Ragged batch: exercises the partial-last-block row mask (no wrapper-side pad).
    x2 = jax.random.normal(kx2, (13, 40), dtype=jnp.float32)
    target2 = jax.random.randint(kt2, (13,), 0, 40, dtype=jnp.int32)
    loss2 = jax.block_until_ready(label_smoothing_cross_entropy(x2, target2, smoothing))
    ref2 = _reference(x2, target2, smoothing)
    assert jnp.allclose(loss2, ref2, atol=1e-5, rtol=1e-5), (loss2, ref2)

    print("KERNEL_OK")
</pallas_src>

<mosaic_0001>
module attributes {stable_mosaic.version = 11 : i64} {
  func.func @_ls_ce_kernel(%arg0: i32, %arg1: i32, %arg2: i32, %arg3: memref<16x32xf32, #tpu.memory_space<vmem>>, %arg4: memref<16x1xi32, #tpu.memory_space<vmem>>, %arg5: memref<8x128xf32, #tpu.memory_space<vmem>>, %arg6: memref<16x1xf32, #tpu.memory_space<vmem>>, %arg7: memref<16x1xf32, #tpu.memory_space<vmem>>, %arg8: memref<16x1xf32, #tpu.memory_space<vmem>>, %arg9: memref<16x1xf32, #tpu.memory_space<vmem>>) attributes {dimension_semantics = [#tpu.dimension_semantics<parallel>, #tpu.dimension_semantics<arbitrary>, #tpu.dimension_semantics<arbitrary>], iteration_bounds = array<i64: 1, 1, 1>, scalar_prefetch = 0 : i64, scratch_operands = 4 : i64, tpu.core_type = #tpu.core_type<tc>, window_params = [{transform_indices = @transform_0, window_bounds = array<i64: 16, 32>}, {transform_indices = @transform_1, window_bounds = array<i64: 16, 1>}, {transform_indices = @transform_2, window_bounds = array<i64: 8, 128>}]} {
    %c0_i32 = arith.constant 0 : i32
    %0 = arith.cmpi eq, %arg2, %c0_i32 : i32
    %c0_i32_0 = arith.constant 0 : i32
    %1 = arith.cmpi eq, %arg1, %c0_i32_0 : i32
    %c0_i32_1 = arith.constant 0 : i32
    %2 = arith.cmpi eq, %arg2, %c0_i32_1 : i32
    %3 = arith.andi %1, %2 : i1
    %4 = arith.extui %3 : i1 to i32
    %c0_i32_2 = arith.constant 0 : i32
    %5 = arith.cmpi ne, %4, %c0_i32_2 : i32
    scf.if %5 {
      %cst_27 = arith.constant 0.000000e+00 : f32
      %52 = vector.broadcast %cst_27 : f32 to vector<16x1xf32>
      %c0_28 = arith.constant 0 : index
      %c0_29 = arith.constant 0 : index
      %53 = vector.load %arg6[%c0_28, %c0_29] : memref<16x1xf32, #tpu.memory_space<vmem>>, vector<16x1xf32>
      tpu.vector_store %arg6[%c0_28, %c0_29], %52 {strides = array<i32>} : memref<16x1xf32, #tpu.memory_space<vmem>>, vector<16x1xf32>,
    } else {
    }
    %c0_i32_3 = arith.constant 0 : i32
    %6 = arith.cmpi eq, %arg2, %c0_i32_3 : i32
    %7 = arith.extui %6 : i1 to i32
    %c0_i32_4 = arith.constant 0 : i32
    %8 = arith.cmpi ne, %7, %c0_i32_4 : i32
    scf.if %8 {
      %cst_27 = arith.constant 0xFF800000 : f32
      %52 = vector.broadcast %cst_27 : f32 to vector<16x1xf32>
      %c0_28 = arith.constant 0 : index
      %c0_29 = arith.constant 0 : index
      %53 = vector.load %arg7[%c0_28, %c0_29] : memref<16x1xf32, #tpu.memory_space<vmem>>, vector<16x1xf32>
      tpu.vector_store %arg7[%c0_28, %c0_29], %52 {strides = array<i32>} : memref<16x1xf32, #tpu.memory_space<vmem>>, vector<16x1xf32>,
      %cst_30 = arith.constant 0.000000e+00 : f32
      %54 = vector.broadcast %cst_30 : f32 to vector<16x1xf32>
      %c0_31 = arith.constant 0 : index
      %c0_32 = arith.constant 0 : index
      %55 = vector.load %arg8[%c0_31, %c0_32] : memref<16x1xf32, #tpu.memory_space<vmem>>, vector<16x1xf32>
      tpu.vector_store %arg8[%c0_31, %c0_32], %54 {strides = array<i32>} : memref<16x1xf32, #tpu.memory_space<vmem>>, vector<16x1xf32>,
      %cst_33 = arith.constant 0.000000e+00 : f32
      %56 = vector.broadcast %cst_33 : f32 to vector<16x1xf32>
      %c0_34 = arith.constant 0 : index
      %c0_35 = arith.constant 0 : index
      %57 = vector.load %arg9[%c0_34, %c0_35] : memref<16x1xf32, #tpu.memory_space<vmem>>, vector<16x1xf32>
      tpu.vector_store %arg9[%c0_34, %c0_35], %56 {strides = array<i32>} : memref<16x1xf32, #tpu.memory_space<vmem>>, vector<16x1xf32>,
    } else {
    }
    %c0 = arith.constant 0 : index
    %c0_5 = arith.constant 0 : index
    %9 = vector.load %arg3[%c0, %c0_5] : memref<16x32xf32, #tpu.memory_space<vmem>>, vector<16x32xf32>
    %c0_6 = arith.constant 0 : index
    %c0_7 = arith.constant 0 : index
    %10 = vector.load %arg4[%c0_6, %c0_7] : memref<16x1xi32, #tpu.memory_space<vmem>>, vector<16x1xi32>
    %c32_i32 = arith.constant 32 : i32
    %11 = arith.muli %arg2, %c32_i32 : i32
    %12 = tpu.iota {dimensions = array<i32: 1>} : vector<1x32xi32>
    %13 = vector.broadcast %11 : i32 to vector<1x32xi32>
    %14 = arith.addi %13, %12 : vector<1x32xi32>
    %15 = vector.broadcast %14 : vector<1x32xi32> to vector<16x32xi32>
    %16 = vector.broadcast %10 : vector<16x1xi32> to vector<16x32xi32>
    %17 = arith.cmpi eq, %15, %16 : vector<16x32xi32>
    %18 = arith.extui %17 : vector<16x32xi1> to vector<16x32xi32>
    %19 = arith.sitofp %18 : vector<16x32xi32> to vector<16x32xf32>
    %cst = arith.constant 0.899999976 : f32
    %20 = vector.broadcast %cst : f32 to vector<16x32xf32>
    %21 = arith.mulf %20, %19 : vector<16x32xf32>
    %cst_8 = arith.constant 3.125000e-03 : f32
    %22 = vector.broadcast %cst_8 : f32 to vector<16x32xf32>
    %23 = arith.addf %22, %21 : vector<16x32xf32>
    %c0_9 = arith.constant 0 : index
    %c0_10 = arith.constant 0 : index
    %24 = vector.load %arg7[%c0_9, %c0_10] : memref<16x1xf32, #tpu.memory_space<vmem>>, vector<16x1xf32>
    %cst_11 = arith.constant dense<0xFF800000> : vector<16xf32>
    %25 = vector.multi_reduction <maximumf>, %9, %cst_11 [1] : vector<16x32xf32> to vector<16xf32>
    %26 = vector.shape_cast %25 : vector<16xf32> to vector<16x1xf32>
    %27 = arith.maximumf %24, %26 : vector<16x1xf32>
    %c0_12 = arith.constant 0 : index
    %c0_13 = arith.constant 0 : index
    %28 = vector.load %arg8[%c0_12, %c0_13] : memref<16x1xf32, #tpu.memory_space<vmem>>, vector<16x1xf32>
    %29 = arith.subf %24, %27 : vector<16x1xf32>
    %30 = math.exp %29 : vector<16x1xf32>
    %31 = arith.mulf %28, %30 : vector<16x1xf32>
    %32 = vector.broadcast %27 : vector<16x1xf32> to vector<16x32xf32>
    %33 = arith.subf %9, %32 : vector<16x32xf32>
    %34 = math.exp %33 : vector<16x32xf32>
    %cst_14 = arith.constant dense<0.000000e+00> : vector<16xf32>
    %35 = vector.multi_reduction <add>, %34, %cst_14 [1] : vector<16x32xf32> to vector<16xf32>
    %36 = vector.shape_cast %35 : vector<16xf32> to vector<16x1xf32>
    %37 = arith.addf %31, %36 : vector<16x1xf32>
    %c0_15 = arith.constant 0 : index
    %c0_16 = arith.constant 0 : index
    %38 = vector.load %arg8[%c0_15, %c0_16] : memref<16x1xf32, #tpu.memory_space<vmem>>, vector<16x1xf32>
    tpu.vector_store %arg8[%c0_15, %c0_16], %37 {strides = array<i32>} : memref<16x1xf32, #tpu.memory_space<vmem>>, vector<16x1xf32>,
    %39 = arith.mulf %23, %9 : vector<16x32xf32>
    %c0_17 = arith.constant 0 : index
    %c0_18 = arith.constant 0 : index
    %40 = vector.load %arg9[%c0_17, %c0_18] : memref<16x1xf32, #tpu.memory_space<vmem>>, vector<16x1xf32>
    %cst_19 = arith.constant dense<0.000000e+00> : vector<16xf32>
    %41 = vector.multi_reduction <add>, %39, %cst_19 [1] : vector<16x32xf32> to vector<16xf32>
    %42 = vector.shape_cast %41 : vector<16xf32> to vector<16x1xf32>
    %43 = arith.addf %40, %42 : vector<16x1xf32>
    %c0_20 = arith.constant 0 : index
    %c0_21 = arith.constant 0 : index
    %44 = vector.load %arg9[%c0_20, %c0_21] : memref<16x1xf32, #tpu.memory_space<vmem>>, vector<16x1xf32>
    tpu.vector_store %arg9[%c0_20, %c0_21], %43 {strides = array<i32>} : memref<16x1xf32, #tpu.memory_space<vmem>>, vector<16x1xf32>,
    %c0_22 = arith.constant 0 : index
    %c0_23 = arith.constant 0 : index
    %45 = vector.load %arg7[%c0_22, %c0_23] : memref<16x1xf32, #tpu.memory_space<vmem>>, vector<16x1xf32>
    tpu.vector_store %arg7[%c0_22, %c0_23], %27 {strides = array<i32>} : memref<16x1xf32, #tpu.memory_space<vmem>>, vector<16x1xf32>,
    %46 = arith.extui %0 : i1 to i32
    %c0_i32_24 = arith.constant 0 : i32
    %47 = arith.cmpi ne, %46, %c0_i32_24 : i32
    scf.if %47 {
      %c0_27 = arith.constant 0 : index
      %c0_28 = arith.constant 0 : index
      %52 = vector.load %arg6[%c0_27, %c0_28] : memref<16x1xf32, #tpu.memory_space<vmem>>, vector<16x1xf32>
      %c0_29 = arith.constant 0 : index
      %c0_30 = arith.constant 0 : index
      %53 = vector.load %arg7[%c0_29, %c0_30] : memref<16x1xf32, #tpu.memory_space<vmem>>, vector<16x1xf32>
      %c0_31 = arith.constant 0 : index
      %c0_32 = arith.constant 0 : index
      %54 = vector.load %arg8[%c0_31, %c0_32] : memref<16x1xf32, #tpu.memory_space<vmem>>, vector<16x1xf32>
      %55 = math.log %54 : vector<16x1xf32>
      %56 = arith.addf %53, %55 : vector<16x1xf32>
      %c0_33 = arith.constant 0 : index
      %c0_34 = arith.constant 0 : index
      %57 = vector.load %arg9[%c0_33, %c0_34] : memref<16x1xf32, #tpu.memory_space<vmem>>, vector<16x1xf32>
      %58 = arith.subf %56, %57 : vector<16x1xf32>
      %59 = arith.addf %52, %58 : vector<16x1xf32>
      %c0_35 = arith.constant 0 : index
      %c0_36 = arith.constant 0 : index
      %60 = vector.load %arg6[%c0_35, %c0_36] : memref<16x1xf32, #tpu.memory_space<vmem>>, vector<16x1xf32>
      tpu.vector_store %arg6[%c0_35, %c0_36], %59 {strides = array<i32>} : memref<16x1xf32, #tpu.memory_space<vmem>>, vector<16x1xf32>,
    } else {
    }
    %c0_i32_25 = arith.constant 0 : i32
    %48 = arith.cmpi eq, %arg1, %c0_i32_25 : i32
    %49 = arith.andi %0, %48 : i1
    %50 = arith.extui %49 : i1 to i32
    %c0_i32_26 = arith.constant 0 : i32
    %51 = arith.cmpi ne, %50, %c0_i32_26 : i32
    scf.if %51 {
      %c0_27 = arith.constant 0 : index
      %c0_28 = arith.constant 0 : index
      %52 = vector.load %arg6[%c0_27, %c0_28] : memref<16x1xf32, #tpu.memory_space<vmem>>, vector<16x1xf32>
      %53 = vector.shape_cast %52 : vector<16x1xf32> to vector<1x16x1xf32>
      %cst_29 = arith.constant dense<0.000000e+00> : vector<1xf32>
      %54 = vector.multi_reduction <add>, %53, %cst_29 [1, 2] : vector<1x16x1xf32> to vector<1xf32>
      %55 = vector.shape_cast %54 : vector<1xf32> to vector<1x1x1xf32>
      %56 = vector.extract %55[0, 0, 0] : f32 from vector<1x1x1xf32>
      %57 = tpu.iota {dimensions = array<i32: 0>} : vector<8x128xi32>
      %58 = tpu.iota {dimensions = array<i32: 1>} : vector<8x128xi32>
      %c0_i32_30 = arith.constant 0 : i32
      %59 = vector.broadcast %c0_i32_30 : i32 to vector<8x128xi32>
      %60 = arith.cmpi eq, %57, %59 : vector<8x128xi32>
      %c0_i32_31 = arith.constant 0 : i32
      %61 = vector.broadcast %c0_i32_31 : i32 to vector<8x128xi32>
      %62 = arith.cmpi eq, %58, %61 : vector<8x128xi32>
      %63 = arith.andi %60, %62 : vector<8x128xi1>
      %cst_32 = arith.constant 0.000000e+00 : f32
      %64 = vector.broadcast %56 : f32 to vector<8x128xf32>
      %65 = vector.broadcast %cst_32 : f32 to vector<8x128xf32>
      %66 = arith.select %63, %64, %65 : vector<8x128xi1>, vector<8x128xf32>
      %c0_33 = arith.constant 0 : index
      %c0_34 = arith.constant 0 : index
      %67 = vector.load %arg5[%c0_33, %c0_34] : memref<8x128xf32, #tpu.memory_space<vmem>>, vector<8x128xf32>
      tpu.vector_store %arg5[%c0_33, %c0_34], %66 {strides = array<i32>} : memref<8x128xf32, #tpu.memory_space<vmem>>, vector<8x128xf32>,
    } else {
    }
    return
  }
  func.func @transform_0(%arg0: i32, %arg1: i32, %arg2: i32) -> (i32, i32) {
    %c1_i32 = arith.constant 1 : i32
    %0 = arith.muli %arg0, %c1_i32 : i32
    %1 = arith.addi %0, %arg1 : i32
    %c0_i32 = arith.constant 0 : i32
    %2 = arith.minsi %1, %c0_i32 : i32
    %c0_i32_0 = arith.constant 0 : i32
    return %2, %arg2 : i32, i32
  }
  func.func @transform_1(%arg0: i32, %arg1: i32, %arg2: i32) -> (i32, i32) {
    %c1_i32 = arith.constant 1 : i32
    %0 = arith.muli %arg0, %c1_i32 : i32
    %1 = arith.addi %0, %arg1 : i32
    %c0_i32 = arith.constant 0 : i32
    %2 = arith.minsi %1, %c0_i32 : i32
    %c0_i32_0 = arith.constant 0 : i32
    %c0_i32_1 = arith.constant 0 : i32
    return %2, %c0_i32_0 : i32, i32
  }
  func.func @transform_2(%arg0: i32, %arg1: i32, %arg2: i32) -> (i32, i32) {
    %c0_i32 = arith.constant 0 : i32
    %c0_i32_0 = arith.constant 0 : i32
    return %arg0, %c0_i32 : i32, i32
  }
}

</mosaic_0001>

<bundles_post_ra>
// kernel: tpu_custom_call.1
= control target key start
LH: loop header
LB: loop body
LE: loop exit
PB: predicated region body
PF: predicated region fallthrough
CT: control target
= control target key end

     0   :  { %vm122_vm0 = vcmask 261120   ;;  %s382_s0 = inlined_call_operand.vmem [shape: f32[16,32], index: 0, kind: input, shape index: {}]   ;;  %s383_s1 = inlined_call_operand.vmem [shape: s32[16,1], index: 1, kind: input, shape index: {}]   ;;  %s384_s2 = inlined_call_operand.hbm [shape: f32[8,128], index: 2, kind: output, shape index: {}]  }
   0x1   :  { %v95_v0 = vld [vmem:[%s382_s0] sm:$0xff]  ;;  %v328_v1 = vld [vmem:[%s382_s0 + $0x8] sm:$0xff] }
   0x2   :  { %7 = vsyncpa [#allocation7], 0  ;;  %v123_v2 = vsel %vm122_vm0, %v95_v0, -inf  ;;  %v126_v3 = vsel %vm122_vm0, %v328_v1, -inf  ;;  %vm82_vm1 = vcmask 7168   ;;  %v303_v4 = vmov -inf  }
   0x3   :  { %124 = vmax.xlane.f32.xlu0 %v123_v2  ;;  %89 = vst.msk [vmem:[#allocation3] sm:$0xff] %vm82_vm1, %v303_v4  ;;  %90 = vst.msk [vmem:[#allocation3 + $0x8] sm:$0xff] %vm82_vm1, %v303_v4  ;;  %v304_v5 = vmov 0   ;;  %v305_v6 = vmov 0.0   ;;  %v97_v7 = vld [vmem:[%s383_s1] sm:$0xff]  ;;  %v98_v16 = vld [vmem:[%s383_s1 + $0x8] sm:$0xff]  ;;  %v100_v17 = vlaneseq }
   0x4   :  { %265 = vset.pattern.permute.xlu1 %v304_v5  ;;  %266 = vset.pattern.permute.xlu0 %v304_v5  ;;  %83 = vst.msk [vmem:[#allocation2] sm:$0xff] %vm82_vm1, %v305_v6  ;;  %84 = vst.msk [vmem:[#allocation2 + $0x8] sm:$0xff] %vm82_vm1, %v305_v6  ;;  %s306_s1 = smov [#allocation6]  }
   0x5   :  { %91 = vst.msk [vmem:[#allocation4] sm:$0xff] %vm82_vm1, %v305_v6  ;;  %92 = vst.msk [vmem:[#allocation4 + $0x8] sm:$0xff] %vm82_vm1, %v305_v6  ;;  %v350_v18 = vand.u32 127, %v100_v17  ;;  %s237_s16 = sshll.u32 %s306_s1, 4  ;;  %s238_s16 = int_to_ptr.vmem [resolvable:$true] %s237_s16 }
   0x6   :  { %93 = vst.msk [vmem:[#allocation5] sm:$0xff] %vm82_vm1, %v305_v6  ;;  %94 = vst.msk [vmem:[#allocation5 + $0x8] sm:$0xff] %vm82_vm1, %v305_v6  ;;  %s279_s18 = scalar_lea.vmem %s238_s16, 128  ;;  %p284_p1 = scmp.lt.s32.totalorder %s238_s16, %s238_s16 }
   0x7   :  { %127 = vmax.xlane.f32.xlu0 %v126_v3  ;;  %vm226_vm5 = vcmp.eq.s32.totalorder %v350_v18, 0  ;;  %p280_p0 = scmp.ne.s32.totalorder %s238_s16, %s279_s18  ;;  %p285_p2 = scmp.lt.s32.totalorder %s279_s18, %s279_s18 }
   0x9   :  { %p286_p3 = por %p285_p2, %p284_p1 }
   0xa   :  { %v120_v8 = vld [vmem:[#allocation3] sm:$0xff]  ;;  %v121_v11 = vld [vmem:[#allocation3 + $0x8] sm:$0xff] }
   0xb   :  { %v187_v3 = vld [vmem:[#allocation2] sm:$0xff]  ;;  %p287_p4 = pnand %p286_p3, %p280_p0 }
   0xc   :  { %v131_v47 = vld [vmem:[#allocation4] sm:$0xff]  ;;  %v132_v51 = vld [vmem:[#allocation4 + $0x8] sm:$0xff] }
   0xd   :  { %v170_v42 = vld [vmem:[#allocation5] sm:$0xff]  ;;  %v171_v56 = vld [vmem:[#allocation5 + $0x8] sm:$0xff] }
  0x1d   :  { %105 = vperm.xlu0 %266, %v97_v7  }
  0x90   :  { %v125_v9 = vpop.xlane.xlu0 %124 }
  0x91   :  { %v129_v10 = vmax.f32 %v120_v8, %v125_v9 }
  0x93   :  { %v133_v12 = vsub.f32 %v120_v8, %v129_v10  ;;  %182 = vst.msk [vmem:[#allocation3] sm:$0xff] %vm82_vm1, %v129_v10  ;;  %143 = vperm.xlu1 %265, %v129_v10   ;;  %v188_v10 = vld [vmem:[#allocation2 + $0x8] sm:$0xff] }
  0x94   :  { %v128_v13 = vpop.xlane.xlu0 %127 }
  0x95   :  { %v130_v14 = vmax.f32 %v121_v11, %v128_v13  ;;  %v135_v44 = vmul.f32 1.442695, %v133_v12 }
  0x97   :  { %v134_v15 = vsub.f32 %v121_v11, %v130_v14  ;;  %183 = vst.msk [vmem:[#allocation3 + $0x8] sm:$0xff] %vm82_vm1, %v130_v14  ;;  %148 = vperm.xlu1 %265, %v130_v14  }
  0x99   :  { %v137_v45 = vmul.f32 1.442695, %v134_v15 }
  0x9a   :  { %v189_v63 = vld [vmem:[#allocation3] sm:$0xff] }
  0x9b   :  { %108 = vperm.xlu1 %265, %v98_v16  }
  0x9c   :  { %v106_v19 = vpop.permute.xlu0 %105 }
  0x9d   :  { %vm110_vm2 = vcmp.eq.s32.totalorder %v350_v18, %v106_v19 }
  0x9e   :  { %v257_v20 = vsel %vm110_vm2, 1.0, %v305_v6 }
  0x9f   :  { %v116_v21 = vmul.f32 0.9, %v257_v20 }
  0xa1   :  { %v118_v22 = vadd.f32 0.003125, %v116_v21 }
  0xa3   :  { %v168_v23 = vmul.f32 %v118_v22, %v95_v0 }
  0xa5   :  { %v172_v24 = vsel %vm122_vm0, %v168_v23, 0.0 }
  0xa6   :  { %173 = vadd.xlane.f32.xlu0 %v172_v24 }
 0x112   :  { %v144_v25 = vpop.permute.xlu1 %143 }
 0x113   :  { %v151_v26 = vsub.f32 %v95_v0, %v144_v25 }
 0x115   :  { %v153_v27 = vmul.f32 1.442695, %v151_v26 }
 0x116   :  { %v149_v28 = vpop.permute.xlu1 %148 }
 0x117   :  { %267 = vpow2.f32 %v153_v27  ;;  %v152_v29 = vsub.f32 %v328_v1, %v149_v28  ;;  %v224_v27 = vshrl.u32 %v100_v17, 7 }
 0x119   :  { %v155_v30 = vmul.f32 1.442695, %v152_v29  ;;  %vm225_vm4 = vcmp.eq.s32.totalorder %v224_v27, 0 }
 0x11a   :  { %v109_v31 = vpop.permute.xlu1 %108  ;;  %vm227_vm6 = vmand %vm225_vm4, %vm226_vm5 }
 0x11b   :  { %269 = vpow2.f32 %v155_v30  ;;  %vm111_vm3 = vcmp.eq.s32.totalorder %v350_v18, %v109_v31 }
 0x11c   :  { %v258_v32 = vsel %vm111_vm3, 1.0, %v305_v6  ;;  %271 = vpow2.f32 %v135_v44  ;;  %v190_v6 = vld [vmem:[#allocation3 + $0x8] sm:$0xff] }
 0x11d   :  { %v117_v33 = vmul.f32 0.9, %v258_v32  ;;  %273 = vpow2.f32 %v137_v45 }
 0x11f   :  { %v119_v35 = vadd.f32 0.003125, %v117_v33 }
 0x121   :  { %v268_v34 = vpop.eup %267  ;;  %v169_v39 = vmul.f32 %v119_v35, %v328_v1 }
 0x122   :  { %v157_v36 = vsel %vm122_vm0, %v268_v34, 0.0 }
 0x123   :  { %158 = vadd.xlane.f32.xlu1 %v157_v36  ;;  %v175_v40 = vsel %vm122_vm0, %v169_v39, 0.0 }
 0x125   :  { %v270_v37 = vpop.eup %269 }
 0x126   :  { %v160_v38 = vsel %vm122_vm0, %v270_v37, 0.0  ;;  %v272_v46 = vpop.eup %271 }
 0x127   :  { %161 = vadd.xlane.f32.xlu1 %v160_v38  ;;  %v139_v48 = vmul.f32 %v272_v46, %v131_v47  ;;  %v274_v49 = vpop.eup %273 }
 0x128   :  { %v140_v53 = vmul.f32 %v274_v49, %v132_v51 }
 0x12b   :  { %176 = vadd.xlane.f32.xlu1 %v175_v40 }
 0x133   :  { %v174_v41 = vpop.xlane.xlu0 %173 }
 0x134   :  { %v178_v43 = vadd.f32 %v174_v41, %v170_v42 }
 0x136   :  { %180 = vst.msk [vmem:[#allocation5] sm:$0xff] %vm82_vm1, %v178_v43 }
 0x13d   :  { %v199_v0 = vld [vmem:[#allocation5] sm:$0xff] }
 0x1b0   :  { %v159_v50 = vpop.xlane.xlu1 %158 }
 0x1b1   :  { %v163_v52 = vadd.f32 %v159_v50, %v139_v48 }
 0x1b3   :  { %166 = vst.msk [vmem:[#allocation4] sm:$0xff] %vm82_vm1, %v163_v52 }
 0x1b4   :  { %v162_v54 = vpop.xlane.xlu1 %161 }
 0x1b5   :  { %v164_v55 = vadd.f32 %v162_v54, %v140_v53 }
 0x1b7   :  { %167 = vst.msk [vmem:[#allocation4 + $0x8] sm:$0xff] %vm82_vm1, %v164_v55 }
 0x1b8   :  { %v177_v57 = vpop.xlane.xlu1 %176 }
 0x1b9   :  { %v179_v58 = vadd.f32 %v177_v57, %v171_v56 }
 0x1ba   :  { %v191_v59 = vld [vmem:[#allocation4] sm:$0xff] }
 0x1bb   :  { %275 = vlog2.f32 %v191_v59  ;;  %181 = vst.msk [vmem:[#allocation5 + $0x8] sm:$0xff] %vm82_vm1, %v179_v58 }
 0x1be   :  { %v192_v60 = vld [vmem:[#allocation4 + $0x8] sm:$0xff] }
 0x1bf   :  { %277 = vlog2.f32 %v192_v60 }
 0x1c2   :  { %v200_v9 = vld [vmem:[#allocation5 + $0x8] sm:$0xff] }
 0x1c5   :  { %v276_v61 = vpop.eup %275 }
 0x1c6   :  { %v194_v62 = vmul.f32 0.6931472, %v276_v61 }
 0x1c8   :  { %v197_v1 = vadd.f32 %v194_v62, %v189_v63 }
 0x1c9   :  { %v278_v2 = vpop.eup %277 }
 0x1ca   :  { %v196_v4 = vmul.f32 0.6931472, %v278_v2  ;;  %v201_v5 = vsub.f32 %v197_v1, %v199_v0 }
 0x1cc   :  { %v198_v7 = vadd.f32 %v196_v4, %v190_v6  ;;  %v203_v8 = vadd.f32 %v201_v5, %v187_v3 }
 0x1ce   :  { %v202_v11 = vsub.f32 %v198_v7, %v200_v9  ;;  %205 = vst.msk [vmem:[#allocation2] sm:$0xff] %vm82_vm1, %v203_v8 }
 0x1d0   :  { %v204_v12 = vadd.f32 %v202_v11, %v188_v10 }
 0x1d2   :  { %206 = vst.msk [vmem:[#allocation2 + $0x8] sm:$0xff] %vm82_vm1, %v204_v12 }
 0x1d5   :  { %v209_v13 = vld [vmem:[#allocation2] sm:$0xff] }
 0x1d6   :  { %v211_v15 = vsel %vm82_vm1, %v209_v13, 0.0 }
 0x1d9   :  { %v210_v14 = vld [vmem:[#allocation2 + $0x8] sm:$0xff] }
 0x1da   :  { %v212_v16 = vsel %vm82_vm1, %v210_v14, 0.0 }
 0x1db   :  { %v213_v19 = vadd.f32 %v212_v16, %v211_v15 }
 0x1dd   :  { %214 = vadd.xlane.f32.xlu1 %v213_v19 }
 0x26a   :  { %v215_v20 = vpop.xlane.xlu1 %214 }
 0x26b   :  { %v216_v21 = vrot.slane %v215_v20, 4 }
 0x26d   :  { %v217_v22 = vadd.f32 %v216_v21, %v215_v20 }
 0x26f   :  { %v218_v23 = vrot.slane %v217_v22, 2 }
 0x271   :  { %v219_v24 = vadd.f32 %v218_v23, %v217_v22 }
 0x273   :  { %v220_v25 = vrot.slane %v219_v24, 1 }
 0x275   :  { %v221_v26 = vadd.f32 %v220_v25, %v219_v24 }
 0x277   :  { %259 = vpush %v221_v26 }
 0x2a8   :  { %s260_s17 = spop %259 }
 0x2a9   :  { %v228_v28 = vstv %s260_s17 }
 0x2aa   :  { %v229_v29 = vsel %vm227_vm6, %v228_v28, 0.0 }
 0x2ab   :  { %230 = vst [vmem:[#allocation6] sm:$0xff] %v229_v29 }
 0x2ac   :  { %290 = shalt.err (!%p287_p4)
}
 0x2ad   :  { %s291_s21 = scalar_lea.hbm %s384_s2, 128 }
 0x2ae   :  { %p292_p5 = scmp.ne.s32.totalorder %s384_s2, %s291_s21  ;;  %p295_p6 = scmp.lt.u32.totalorder %s291_s21, %s384_s2 }
 0x2b0   :  { %p297_p7 = pnand %p295_p6, %p292_p5 }
 0x2b2   :  { %300 = shalt.err (!%p297_p7)
}
 0x2b3   :  { %240 = dma.vmem_to_hbm [thread:$0]  %s238_s16, 128, %s384_s2, [#allocation7]  }
 0x2b4   :  { %301 = dma.done.wait [#allocation7], 128  }
 0x2b5   :  { %302 = vsyncadd [#allocation7], 4294967168 }
 0x2b6   :  { %244 = vsyncpa [#allocation7], 1 }

</bundles_post_ra>
